<compile_context>
chip_gen: v7x
topology: tpu7x:2x2x1
jax: 0.10.0
libtpu: 0.0.40
codegen_flags: <defaults>
</compile_context>

<pallas_src>
import functools

import jax
import jax.numpy as jnp
from jax.experimental import pallas as pl
from jax.experimental.pallas import tpu as pltpu

SMOOTH = 1.0
_ACC_W = 128                            # lane width of per-channel partial sums
_VMEM_INPUT_BUDGET = 20 * 1024 * 1024   # 2 inputs x 2 buffers x C x tile x itemsize cap
_VMEM_LIMIT = 48 * 1024 * 1024          # safe on v5e/v6e (128 MiB) and v7x (64 MiB)


def _round_up(x, m):
    return ((x + m - 1) // m) * m


def _dice_kernel(pred_ref, true_ref, inter_ref, psum_ref):
    """Accumulate per-channel lane-partial sums of p*t and p+t.

    pred_ref / true_ref : (C, TILE_L) VMEM tiles of the flattened spatial axis.
    inter_ref / psum_ref: (1, C, 128) resident output accumulators (one block
                          per reduction half; init on the half's first step).
    """
    n = pl.program_id(1)
    t = pl.program_id(2)

    @pl.when((n == 0) & (t == 0))
    def _():
        inter_ref[...] = jnp.zeros_like(inter_ref)
        psum_ref[...] = jnp.zeros_like(psum_ref)

    c, tile_l = pred_ref.shape
    nchunks = tile_l // _ACC_W

    acc_i = jnp.zeros((c, _ACC_W), jnp.float32)
    acc_s = jnp.zeros((c, _ACC_W), jnp.float32)
    # Static unroll over lane-aligned chunks: pure VPU multiply/adds into
    # 128-wide lane partials; the only cross-lane reduce for the whole kernel
    # happens once, in the JAX glue, on the tiny (2, C, 128) outputs.
    for k in range(nchunks):
        sl = slice(k * _ACC_W, (k + 1) * _ACC_W)
        p = pred_ref[:, sl].astype(jnp.float32)
        q = true_ref[:, sl].astype(jnp.float32)
        acc_i = acc_i + p * q
        acc_s = acc_s + (p + q)

    inter_ref[...] += acc_i[None]
    psum_ref[...] += acc_s[None]


@functools.partial(jax.jit, static_argnames=("block_l",))
def dice_loss(y_pred, y_true, *, block_l=16384):
    """Pallas implementation of DiceLoss.forward for NCHW inputs."""
    assert y_pred.shape == y_true.shape
    n, c, h, w = y_pred.shape
    l = h * w

    # Free, contiguous reshape (no transpose, no extra HBM traffic).
    pred3 = y_pred.reshape(n, c, l)
    true3 = y_true.reshape(n, c, l)

    # --- Tile-size selection (VMEM-budgeted, padding-minimizing) -----------
    itemsize = max(jnp.dtype(y_pred.dtype).itemsize,
                   jnp.dtype(y_true.dtype).itemsize)
    max_tile_vmem = max(_ACC_W, _VMEM_INPUT_BUDGET // (4 * c * itemsize))
    tile_guess = max(_ACC_W, min(block_l, max_tile_vmem, _round_up(l, _ACC_W)))
    tile_guess = (tile_guess // _ACC_W) * _ACC_W
    t_total = max(2, -(-l // tile_guess))   # >= 2 so the reduction splits in halves
    t_total += t_total % 2                  # even tile count (one half per v7x core)
    tile_l = _round_up(-(-l // t_total), _ACC_W)
    l_pad = tile_l * t_total
    t_half = t_total // 2

    if l_pad != l:   # zero padding is sum-neutral
        pred3 = jnp.pad(pred3, ((0, 0), (0, 0), (0, l_pad - l)))
        true3 = jnp.pad(true3, ((0, 0), (0, 0), (0, l_pad - l)))

    in_spec = pl.BlockSpec(
        (pl.Squeezed(), c, tile_l),
        lambda hx, nx, tx: (nx, 0, hx * t_half + tx),
    )
    out_spec = pl.BlockSpec((1, c, _ACC_W), lambda hx, nx, tx: (hx, 0, 0))

    inter, psum = pl.pallas_call(
        _dice_kernel,
        out_shape=(
            jax.ShapeDtypeStruct((2, c, _ACC_W), jnp.float32),
            jax.ShapeDtypeStruct((2, c, _ACC_W), jnp.float32),
        ),
        grid_spec=pltpu.PrefetchScalarGridSpec(
            num_scalar_prefetch=0,
            grid=(2, n, t_half),
            in_specs=[in_spec, in_spec],
            out_specs=[out_spec, out_spec],
        ),
        compiler_params=pltpu.CompilerParams(
            dimension_semantics=("parallel", "arbitrary", "arbitrary"),
            vmem_limit_bytes=_VMEM_LIMIT,
        ),
    )(pred3, true3)

    # Tiny final reduction + dice formula (glue).
    inter_c = jnp.sum(inter, axis=(0, 2))   # (C,)
    psum_c = jnp.sum(psum, axis=(0, 2))     # (C,) == sum(p) + sum(t)
    dsc = (2.0 * inter_c + SMOOTH) / (psum_c + SMOOTH)
    return 1.0 - jnp.mean(dsc)


def _dice_loss_ref(y_pred, y_true):
    """Pure-JAX reference matching the PyTorch forward."""
    c = y_pred.shape[1]
    p = jnp.transpose(y_pred, (1, 0, 2, 3)).reshape(c, -1).astype(jnp.float32)
    t = jnp.transpose(y_true, (1, 0, 2, 3)).reshape(c, -1).astype(jnp.float32)
    inter = jnp.sum(p * t, axis=1)
    dsc = (2.0 * inter + SMOOTH) / (jnp.sum(p, axis=1) + jnp.sum(t, axis=1) + SMOOTH)
    return 1.0 - jnp.mean(dsc)


if __name__ == "__main__":
    key = jax.random.PRNGKey(0)
    k1, k2 = jax.random.split(key)
    # Small NCHW shapes: batch=2, channels=4, spatial=16x16.
    y_pred = jax.random.uniform(k1, (2, 4, 16, 16), dtype=jnp.float32)
    y_true = (jax.random.uniform(k2, (2, 4, 16, 16)) > 0.5).astype(jnp.float32)

    loss = dice_loss(y_pred, y_true)
    jax.block_until_ready(loss)

    ref = _dice_loss_ref(y_pred, y_true)
    assert jnp.allclose(loss, ref, atol=1e-5, rtol=1e-5), (loss, ref)

    print("KERNEL_OK")
</pallas_src>

<mosaic_0001>
module attributes {stable_mosaic.version = 11 : i64} {
  func.func @_dice_kernel(%arg0: i32, %arg1: i32, %arg2: i32, %arg3: memref<1x4x128xf32, #tpu.memory_space<vmem>>, %arg4: memref<1x4x128xf32, #tpu.memory_space<vmem>>, %arg5: memref<1x4x128xf32, #tpu.memory_space<vmem>>, %arg6: memref<1x4x128xf32, #tpu.memory_space<vmem>>) attributes {dimension_semantics = [#tpu.dimension_semantics<parallel>, #tpu.dimension_semantics<arbitrary>, #tpu.dimension_semantics<arbitrary>], iteration_bounds = array<i64: 2, 2, 1>, scalar_prefetch = 0 : i64, scratch_operands = 0 : i64, tpu.core_type = #tpu.core_type<tc>, window_params = [{transform_indices = @transform_0, window_bounds = array<i64: 1, 4, 128>}, {transform_indices = @transform_1, window_bounds = array<i64: 1, 4, 128>}, {transform_indices = @transform_2, window_bounds = array<i64: 1, 4, 128>}, {transform_indices = @transform_3, window_bounds = array<i64: 1, 4, 128>}]} {
    %c0_i32 = arith.constant 0 : i32
    %0 = arith.cmpi eq, %arg1, %c0_i32 : i32
    %c0_i32_0 = arith.constant 0 : i32
    %1 = arith.cmpi eq, %arg2, %c0_i32_0 : i32
    %2 = arith.andi %0, %1 : i1
    %3 = arith.extui %2 : i1 to i32
    %c0_i32_1 = arith.constant 0 : i32
    %4 = arith.cmpi ne, %3, %c0_i32_1 : i32
    scf.if %4 {
      %cst_20 = arith.constant 0.000000e+00 : f32
      %23 = vector.broadcast %cst_20 : f32 to vector<1x4x128xf32>
      %c0_21 = arith.constant 0 : index
      %c0_22 = arith.constant 0 : index
      %c0_23 = arith.constant 0 : index
      %24 = vector.load %arg5[%c0_21, %c0_22, %c0_23] : memref<1x4x128xf32, #tpu.memory_space<vmem>>, vector<1x4x128xf32>
      tpu.vector_store %arg5[%c0_21, %c0_22, %c0_23], %23 {strides = array<i32>} : memref<1x4x128xf32, #tpu.memory_space<vmem>>, vector<1x4x128xf32>,
      %cst_24 = arith.constant 0.000000e+00 : f32
      %25 = vector.broadcast %cst_24 : f32 to vector<1x4x128xf32>
      %c0_25 = arith.constant 0 : index
      %c0_26 = arith.constant 0 : index
      %c0_27 = arith.constant 0 : index
      %26 = vector.load %arg6[%c0_25, %c0_26, %c0_27] : memref<1x4x128xf32, #tpu.memory_space<vmem>>, vector<1x4x128xf32>
      tpu.vector_store %arg6[%c0_25, %c0_26, %c0_27], %25 {strides = array<i32>} : memref<1x4x128xf32, #tpu.memory_space<vmem>>, vector<1x4x128xf32>,
    } else {
    }
    %cst = arith.constant 0.000000e+00 : f32
    %5 = vector.broadcast %cst : f32 to vector<4x128xf32>
    %cst_2 = arith.constant 0.000000e+00 : f32
    %6 = vector.broadcast %cst_2 : f32 to vector<4x128xf32>
    %c0 = arith.constant 0 : index
    %c0_3 = arith.constant 0 : index
    %c0_4 = arith.constant 0 : index
    %7 = vector.load %arg3[%c0, %c0_3, %c0_4] : memref<1x4x128xf32, #tpu.memory_space<vmem>>, vector<1x4x128xf32>
    %8 = vector.shape_cast %7 : vector<1x4x128xf32> to vector<4x128xf32>
    %c0_5 = arith.constant 0 : index
    %c0_6 = arith.constant 0 : index
    %c0_7 = arith.constant 0 : index
    %9 = vector.load %arg4[%c0_5, %c0_6, %c0_7] : memref<1x4x128xf32, #tpu.memory_space<vmem>>, vector<1x4x128xf32>
    %10 = vector.shape_cast %9 : vector<1x4x128xf32> to vector<4x128xf32>
    %11 = arith.mulf %8, %10 : vector<4x128xf32>
    %12 = arith.addf %5, %11 : vector<4x128xf32>
    %13 = arith.addf %8, %10 : vector<4x128xf32>
    %14 = arith.addf %6, %13 : vector<4x128xf32>
    %c0_8 = arith.constant 0 : index
    %c0_9 = arith.constant 0 : index
    %c0_10 = arith.constant 0 : index
    %15 = vector.load %arg5[%c0_8, %c0_9, %c0_10] : memref<1x4x128xf32, #tpu.memory_space<vmem>>, vector<1x4x128xf32>
    %16 = vector.shape_cast %12 : vector<4x128xf32> to vector<1x4x128xf32>
    %17 = arith.addf %15, %16 : vector<1x4x128xf32>
    %c0_11 = arith.constant 0 : index
    %c0_12 = arith.constant 0 : index
    %c0_13 = arith.constant 0 : index
    %18 = vector.load %arg5[%c0_11, %c0_12, %c0_13] : memref<1x4x128xf32, #tpu.memory_space<vmem>>, vector<1x4x128xf32>
    tpu.vector_store %arg5[%c0_11, %c0_12, %c0_13], %17 {strides = array<i32>} : memref<1x4x128xf32, #tpu.memory_space<vmem>>, vector<1x4x128xf32>,
    %c0_14 = arith.constant 0 : index
    %c0_15 = arith.constant 0 : index
    %c0_16 = arith.constant 0 : index
    %19 = vector.load %arg6[%c0_14, %c0_15, %c0_16] : memref<1x4x128xf32, #tpu.memory_space<vmem>>, vector<1x4x128xf32>
    %20 = vector.shape_cast %14 : vector<4x128xf32> to vector<1x4x128xf32>
    %21 = arith.addf %19, %20 : vector<1x4x128xf32>
    %c0_17 = arith.constant 0 : index
    %c0_18 = arith.constant 0 : index
    %c0_19 = arith.constant 0 : index
    %22 = vector.load %arg6[%c0_17, %c0_18, %c0_19] : memref<1x4x128xf32, #tpu.memory_space<vmem>>, vector<1x4x128xf32>
    tpu.vector_store %arg6[%c0_17, %c0_18, %c0_19], %21 {strides = array<i32>} : memref<1x4x128xf32, #tpu.memory_space<vmem>>, vector<1x4x128xf32>,
    return
  }
  func.func @transform_0(%arg0: i32, %arg1: i32, %arg2: i32) -> (i32, i32, i32) {
    %c1_i32 = arith.constant 1 : i32
    %0 = arith.muli %arg0, %c1_i32 : i32
    %1 = arith.addi %0, %arg2 : i32
    %c0_i32 = arith.constant 0 : i32
    %c0_i32_0 = arith.constant 0 : i32
    return %arg1, %c0_i32, %1 : i32, i32, i32
  }
  func.func @transform_1(%arg0: i32, %arg1: i32, %arg2: i32) -> (i32, i32, i32) {
    %c1_i32 = arith.constant 1 : i32
    %0 = arith.muli %arg0, %c1_i32 : i32
    %1 = arith.addi %0, %arg2 : i32
    %c0_i32 = arith.constant 0 : i32
    %c0_i32_0 = arith.constant 0 : i32
    return %arg1, %c0_i32, %1 : i32, i32, i32
  }
  func.func @transform_2(%arg0: i32, %arg1: i32, %arg2: i32) -> (i32, i32, i32) {
    %c0_i32 = arith.constant 0 : i32
    %c0_i32_0 = arith.constant 0 : i32
    %c0_i32_1 = arith.constant 0 : i32
    return %arg0, %c0_i32, %c0_i32_0 : i32, i32, i32
  }
  func.func @transform_3(%arg0: i32, %arg1: i32, %arg2: i32) -> (i32, i32, i32) {
    %c0_i32 = arith.constant 0 : i32
    %c0_i32_0 = arith.constant 0 : i32
    %c0_i32_1 = arith.constant 0 : i32
    return %arg0, %c0_i32, %c0_i32_0 : i32, i32, i32
  }
}

</mosaic_0001>

<bundles_post_ra>
// kernel: dice_loss.1
= control target key start
LH: loop header
LB: loop body
LE: loop exit
PB: predicated region body
PF: predicated region fallthrough
CT: control target
= control target key end

     0   :  { %s514_s12 = smov 0   ;;  %s516_s13 = smov 0   ;;  %s576_s0 = inlined_call_operand.vmem [shape: f32[2,4,256], index: 0, kind: input, shape index: {}]   ;;  %s577_s1 = inlined_call_operand.vmem [shape: f32[2,4,256], index: 1, kind: input, shape index: {}]   ;;  %s578_s2 = inlined_call_operand.vmem [shape: f32[2,4,128], index: 2, kind: output, shape index: {0}]   ;;  %s579_s3 = inlined_call_operand.vmem [shape: f32[2,4,128], index: 3, kind: output, shape index: {1}]  }
   0x1   :  { %s518_s14 = smov 0   ;;  %s520_s15 = smov 0  }
   0x2   :  { %s522_s16 = smov 0  }
   0x3 LB: > { %s29_s17 = sadd.s32 1, %s483_s14  ;;  %s33_s18 = sadd.s32 1, %s487_s15  ;;  %s491_s16 = sphi %s522_s16, %s14_s16   ;;  %s487_s15 = sphi %s520_s15, %s583_s15   ;;  %s483_s14 = sphi %s518_s14, %s582_s14   ;;  %s479_s13 = sphi %s516_s13, %s581_s13   ;;  %s475_s12 = sphi %s514_s12, %s580_s12  }
   0x4   : > { %p31_p0 = scmp.ge.s32.totalorder %s29_s17, 2  ;;  %p401_p1 = scmp.ge.s32.totalorder %s491_s16, 1 }
   0x5   : > { %p187_p2 = scmp.lt.s32.totalorder %s491_s16, 5 }
   0x6   : > { %s585_s17 = smov (%p31_p0, %s29_s17), 0  ;;  %s587_s18 = smov (!%p31_p0, %s33_s18), %s487_s15 }
   0x7   : > { %p188_p3 = pnand %p401_p1, %p187_p2  ;;  %p35_p4 = scmp.ge.s32.totalorder %s587_s18, 2 }
   0x8   : > { %p228_p5 = scmp.lt.s32.totalorder (!%p188_p3), %s475_s12, 1  ;;  %p230_p6 = scmp.lt.s32.totalorder (!%p188_p3), %s479_s13, 1 }
   0x9   : > { %s589_s18 = smov (%p35_p4, %s587_s18), 0  ;;  %191 = sbr.rel (%p188_p3) target bundleno = 35 (0x23), region = 28 }
   0xa   : > { %p255_p7 = scmp.eq.s32.totalorder (!%p188_p3), %s475_s12, 0 }
  0x10   : > { %s591_s12 = smov (!%p228_p5, %s475_s12), 1  ;;  %s593_s13 = smov (!%p230_p6, %s479_s13), 1 }
  0x11   : > { %s402_s19 = sshll.u32 %s591_s12, 1  ;;  %s406_s21 = sshll.u32 %s593_s13, 2  ;;  %v493_v0 = vmov (%p255_p7), 0.0  }
  0x12   : > { %s233_s20 = sadd.s32 %s402_s19, %s593_s13  ;;  %s250_s25 = scalar_lea.vmem %s578_s2, %s406_s21 }
  0x13   : > { %s403_s22 = sshll.u32 %s233_s20, 2  ;;  %s254_s7 = scalar_lea.vmem %s579_s3, %s406_s21  ;;  %261 = vst [vmem:[%s250_s25] sm:$0xf] (%p255_p7), %v493_v0 }
  0x14   : > { %s235_s28 = scalar_lea.vmem %s576_s0, %s403_s22  ;;  %s245_s4 = scalar_lea.vmem %s577_s1, %s403_s22  ;;  %262 = vst [vmem:[%s254_s7] sm:$0xf] (%p255_p7), %v493_v0 }
  0x15   : > { %260 = sbr.rel (!%p255_p7) target bundleno = 28 (0x1c), region = 32 }
  0x1c PF: > { %v263_v1 = vld [vmem:[%s235_s28] sm:$0xf] }
  0x1d   : > { %v264_v2 = vld [vmem:[%s245_s4] sm:$0xf] }
  0x1e   : > { %v269_v3 = vld [vmem:[%s250_s25] sm:$0xf]  ;;  %v265_v4 = vmul.f32 %v264_v2, %v263_v1  ;;  %v267_v5 = vadd.f32 %v264_v2, %v263_v1 }
  0x1f   : > { %v272_v6 = vld [vmem:[%s254_s7] sm:$0xf] }
  0x20   : > { %v270_v7 = vadd.f32 %v269_v3, %v265_v4  ;;  %v273_v8 = vadd.f32 %v272_v6, %v267_v5 }
  0x22   : > { %271 = vst [vmem:[%s250_s25] sm:$0xf] %v270_v7  ;;  %274 = vst [vmem:[%s254_s7] sm:$0xf] %v273_v8 }
  0x23 PF: > { %s14_s16 = sadd.s32 1, %s491_s16   ;;  %s580_s12 = smov %s483_s14 }
  0x24   : > { %p11_p8 = scmp.ge.s32.totalorder %s14_s16, 6   ;;  %s581_s13 = smov %s487_s15 }
  0x25   : > { %s582_s14 = smov %s585_s17  ;;  %s583_s15 = smov %s589_s18 }
  0x26   :  { %13 = sbr.rel (!%p11_p8) target bundleno = 3 (0x3), region = 77 }

</bundles_post_ra>
